<compile_context>
chip_gen: v6e
topology: v6e:2x2x1
jax: 0.10.0
libtpu: 0.0.40
codegen_flags: <defaults>
</compile_context>

<pallas_src>
import jax
import jax.numpy as jnp
from jax.experimental import pallas as pl
from jax.experimental.pallas import tpu as pltpu


def layout_branch_kernel(w_ref, x_ref, o_ref):
    # x_ref: (1, C, T)   w_ref: (1, C)   o_ref: (1, C, T)
    x = x_ref[0]                                   # (C, T), input dtype
    w = w_ref[...].astype(jnp.float32)             # (1, C)
    # 1x1 conv with a single output channel == channel-weighted sum (MXU dot).
    y = jnp.dot(w, x.astype(jnp.float32),
                preferred_element_type=jnp.float32)        # (1, T) f32
    gate = jax.nn.sigmoid(y)                               # (1, T) f32
    # Gate in the input dtype: avoid materializing a second f32 copy of x.
    o_ref[0] = x * gate.astype(x.dtype)


def _choose_spatial_tile(hw, target=2048):
    """Largest multiple of 128 that divides hw and is <= target.

    If hw is not a multiple of 128 we fall back to a single whole-HW block
    (still correct; only the stores become masked)."""
    if hw % 128 != 0:
        return hw
    for d in range(min(target, hw) // 128, 0, -1):
        cand = 128 * d
        if hw % cand == 0:
            return cand
    return hw


def layout_branch(x_nchw, conv_weight, *, tile_target=2048):
    """x_nchw: (N, 64, H, W). conv_weight: (1, 64, 1, 1) from Conv2d(64,1,1,bias=False)."""
    N, C, H, W = x_nchw.shape
    assert C == 64
    HW = H * W
    T = _choose_spatial_tile(HW, tile_target)
    num_t = HW // T

    x = x_nchw.reshape(N, C, HW)
    w = conv_weight.reshape(1, C).astype(x.dtype)

    itemsize = jnp.dtype(x.dtype).itemsize
    cost = pl.CostEstimate(
        flops=2 * N * C * HW + 2 * N * HW,       # dot + gating multiply
        transcendentals=N * HW,                  # sigmoid
        bytes_accessed=2 * N * C * HW * itemsize + C * itemsize,
    )

    out = pl.pallas_call(
        layout_branch_kernel,
        out_shape=jax.ShapeDtypeStruct((N, C, HW), x.dtype),
        grid_spec=pltpu.PrefetchScalarGridSpec(
            num_scalar_prefetch=0,
            grid=(N, num_t),
            in_specs=[
                pl.BlockSpec((1, C), lambda n, t: (0, 0)),        # conv weight
                pl.BlockSpec((1, C, T), lambda n, t: (n, 0, t)),  # input tile
            ],
            out_specs=pl.BlockSpec((1, C, T), lambda n, t: (n, 0, t)),
        ),
        compiler_params=pltpu.CompilerParams(
            dimension_semantics=("parallel", "parallel"),
            vmem_limit_bytes=32 * 1024 * 1024,
        ),
        cost_estimate=cost,
    )(w, x)

    return out.reshape(N, C, H, W)


def layout_branch_ref(x_nchw, conv_weight):
    # Pure-JAX reference of the PyTorch forward (1x1 conv, no bias).
    w = conv_weight.reshape(1, 64)                     # (O=1, C=64)
    y = jnp.einsum("oc,nchw->nohw", w, x_nchw)         # (N, 1, H, W)
    return jax.nn.sigmoid(y) * x_nchw                  # broadcast over channel dim


if __name__ == "__main__":
    key = jax.random.PRNGKey(0)
    kx, kw = jax.random.split(key)

    N, C, H, W = 2, 64, 16, 16
    x = jax.random.normal(kx, (N, C, H, W), dtype=jnp.float32)
    # Deterministic Conv2d(64, 1, 1, bias=False) weight, shape (out=1, in=64, 1, 1)
    conv_w = (jax.random.normal(kw, (1, C, 1, 1), dtype=jnp.float32)
              * (1.0 / jnp.sqrt(jnp.float32(C))))

    out = layout_branch(x, conv_w)
    out = jax.block_until_ready(out)
    print('lblb-x', (N, 1, H, W))   # mirror the module's print of the conv output shape

    ref = layout_branch_ref(x, conv_w)
    assert out.shape == (N, C, H, W)
    assert jnp.allclose(out, ref, atol=1e-5, rtol=1e-5), "mismatch vs reference"
    print("KERNEL_OK")
</pallas_src>

<mosaic_0001>
module attributes {stable_mosaic.version = 11 : i64} {
  func.func @layout_branch_kernel(%arg0: i32, %arg1: i32, %arg2: memref<1x64xf32, #tpu.memory_space<vmem>>, %arg3: memref<1x64x256xf32, #tpu.memory_space<vmem>>, %arg4: memref<1x64x256xf32, #tpu.memory_space<vmem>>) attributes {dimension_semantics = [#tpu.dimension_semantics<parallel>, #tpu.dimension_semantics<parallel>], iteration_bounds = array<i64: 2, 1>, scalar_prefetch = 0 : i64, scratch_operands = 0 : i64, tpu.core_type = #tpu.core_type<tc>, window_params = [{pipeline_mode = #tpu.pipeline_mode<synchronous>, transform_indices = @transform_0, window_bounds = array<i64: 1, 64>}, {transform_indices = @transform_1, window_bounds = array<i64: 1, 64, 256>}, {transform_indices = @transform_2, window_bounds = array<i64: 1, 64, 256>}]} {
    %c0 = arith.constant 0 : index
    %c0_0 = arith.constant 0 : index
    %c0_1 = arith.constant 0 : index
    %0 = vector.load %arg3[%c0, %c0_0, %c0_1] : memref<1x64x256xf32, #tpu.memory_space<vmem>>, vector<1x64x256xf32>
    %1 = vector.shape_cast %0 : vector<1x64x256xf32> to vector<64x256xf32>
    %c0_2 = arith.constant 0 : index
    %c0_3 = arith.constant 0 : index
    %2 = vector.load %arg2[%c0_2, %c0_3] : memref<1x64xf32, #tpu.memory_space<vmem>>, vector<1x64xf32>
    %cst = arith.constant dense<0.000000e+00> : vector<1x256xf32>
    %3 = tpu.matmul %2, %1, %cst {dimension_numbers = #tpu.dot_dimension_numbers<[1], [0], [0], [1], [0, 0, 1, 1], [], []>} : vector<1x64xf32>, vector<64x256xf32>, vector<1x256xf32> -> vector<1x256xf32>
    %4 = arith.negf %3 : vector<1x256xf32>
    %5 = math.exp %4 : vector<1x256xf32>
    %cst_4 = arith.constant 1.000000e+00 : f32
    %6 = vector.broadcast %cst_4 : f32 to vector<1x256xf32>
    %7 = arith.addf %6, %5 : vector<1x256xf32>
    %8 = arith.divf %6, %7 : vector<1x256xf32>
    %9 = vector.broadcast %8 : vector<1x256xf32> to vector<64x256xf32>
    %10 = arith.mulf %1, %9 : vector<64x256xf32>
    %c0_5 = arith.constant 0 : index
    %c0_6 = arith.constant 0 : index
    %c0_7 = arith.constant 0 : index
    %11 = vector.load %arg4[%c0_5, %c0_6, %c0_7] : memref<1x64x256xf32, #tpu.memory_space<vmem>>, vector<1x64x256xf32>
    %12 = vector.shape_cast %11 : vector<1x64x256xf32> to vector<64x256xf32>
    %13 = vector.shape_cast %10 : vector<64x256xf32> to vector<1x64x256xf32>
    tpu.vector_store %arg4[%c0_5, %c0_6, %c0_7], %13 {strides = array<i32>} : memref<1x64x256xf32, #tpu.memory_space<vmem>>, vector<1x64x256xf32>,
    return
  }
  func.func @transform_0(%arg0: i32, %arg1: i32) -> (i32, i32) {
    %c0_i32 = arith.constant 0 : i32
    %c0_i32_0 = arith.constant 0 : i32
    %c0_i32_1 = arith.constant 0 : i32
    return %c0_i32, %c0_i32_0 : i32, i32
  }
  func.func @transform_1(%arg0: i32, %arg1: i32) -> (i32, i32, i32) {
    %c0_i32 = arith.constant 0 : i32
    %c0_i32_0 = arith.constant 0 : i32
    return %arg0, %c0_i32, %arg1 : i32, i32, i32
  }
  func.func @transform_2(%arg0: i32, %arg1: i32) -> (i32, i32, i32) {
    %c0_i32 = arith.constant 0 : i32
    %c0_i32_0 = arith.constant 0 : i32
    return %arg0, %c0_i32, %arg1 : i32, i32, i32
  }
}

</mosaic_0001>

<bundles_post_ra>
// kernel: tpu_custom_call.1
= control target key start
LH: loop header
LB: loop body
LE: loop exit
PB: predicated region body
PF: predicated region fallthrough
CT: control target
= control target key end

     0   :  { %7 = vsyncpa [#allocation3], 0  ;;  %s946_s0 = inlined_call_operand.hbm [shape: f32[1,64], index: 0, kind: input, shape index: {}]   ;;  %s947_s1 = inlined_call_operand.hbm [shape: f32[2,64,256], index: 1, kind: input, shape index: {}]   ;;  %s948_s2 = inlined_call_operand.hbm [shape: f32[2,64,256], index: 2, kind: output, shape index: {}]  }
   0x1   :  { %8 = vsyncpa [#allocation6], 0 }
   0x2   :  { %10 = vsyncpa [#allocation6 + $0x1], 0 }
   0x3   :  { %11 = vsyncpa [#allocation4], 0 }
   0x4   :  { %13 = vsyncpa [#allocation4 + $0x1], 0  ;;  %s725_s9 = smov 0   ;;  %s727_s10 = smov 0  }
   0x5   :  { %s729_s11 = smov 0   ;;  %s731_s12 = smov 0  }
   0x6   :  { %s733_s13 = smov 0   ;;  %s735_s14 = smov 0  }
   0x7 LB: > { %s454_s15 = sadd.s32 4294967295, %s700_s14   ;;  %s455_s16 = sadd.s32 4294967294, %s700_s14   ;;  %s700_s14 = sphi %s735_s14, %s19_s14   ;;  %s696_s13 = sphi %s733_s13, %s966_s13   ;;  %s692_s12 = sphi %s731_s12, %s965_s12   ;;  %s688_s11 = sphi %s729_s11, %s964_s11   ;;  %s684_s10 = sphi %s727_s10, %s963_s10   ;;  %s680_s9 = sphi %s725_s9, %s962_s9  }
   0x8   : > { %s61_s17 = sadd.s32 1, %s688_s11  ;;  %p68_p0 = scmp.ne.s32.totalorder %s688_s11, %s684_s10 }
   0x9   : > { %p69_p1 = scmp.eq.s32.totalorder %s700_s14, 0  ;;  %p74_p2 = scmp.ne.s32.totalorder %s684_s10, %s680_s9 }
   0xa   : > { %p763_p3 = scmp.eq.s32.totalorder %s454_s15, 0  ;;  %p100_p4 = scmp.eq.s32.totalorder %s454_s15, 1 }
   0xb   : > { %p767_p5 = por %p69_p1, %p68_p0  ;;  %p106_p6 = scmp.eq.s32.totalorder %s455_s16, 1 }
   0xc   : > { %p773_p7 = por %p763_p3, %p74_p2  ;;  %p777_p8 = por %p100_p4, %p68_p0 }
   0xd   : > { %p781_p9 = por %p106_p6, %p74_p2  ;;  %p456_p10 = scmp.ge.s32.totalorder %s700_s14, 1 }
   0xe   : > { %s953_s21 = scalar_select %p777_p8, 1, 0 }
   0xf   : > { %s954_s22 = scalar_select %p781_p9, 1, 0 }
  0x10   : > { %p113_p11 = scmp.lt.s32.totalorder %s700_s14, 3  ;;  %s702_s24 = smov [#allocation2]  }
  0x11   : > { %s126_s25 = sshll.u32 %s702_s24, 4  ;;  %p497_p1 = scmp.lt.s32.totalorder %s700_s14, 2  ;;  %s127_s25 = int_to_ptr.vmem [resolvable:$true] %s126_s25 }
  0x12   : > { %p788_p13 = pnand %p456_p10, %p113_p11  ;;  %s31_s28 = sadd.s32 1, %s696_s13 }
  0x13   : > { %p797_p4 = pnand %p497_p1, %p767_p5  ;;  %p808_p6 = scmp.ge.s32.totalorder %s31_s28, 2 }
  0x14   : > { %p484_p0 = pneg %p788_p13  ;;  %s137_s30 = sand.u32 1, %s688_s11  }
  0x15   : > { %s573_s3 = scalar_lea.vmem %s127_s25, 16  ;;  %s580_s4 = scalar_lea.vmem %s127_s25, 32 }
  0x16   : > { %p803_p2 = pnand %p484_p0, %p763_p3  ;;  %p574_p11 = scmp.ne.s32.totalorder %s127_s25, %s573_s3 }
  0x17   : > { %p581_p12 = scmp.lt.s32.totalorder %s127_s25, %s127_s25  ;;  %p582_p9 = scmp.lt.s32.totalorder %s580_s4, %s573_s3 }
  0x18   : > { %p564_p10 = pneg %p803_p2 }
  0x19   : > { %p583_p0 = por %p582_p9, %p581_p12 }
  0x1a   : > { %p576_p5 = pnand %p574_p11, %p564_p10 }
  0x1c   : > { %p577_p1 = pneg %p576_p5 }
  0x1e   : > { %p584_p8 = pnand %p583_p0, %p577_p1 }
  0x20   : > { %587 = shalt.err (!%p584_p8)
}
  0x21   : > { %487 = dma.hbm_to_vmem [thread:$0]  (!%p803_p2), %s946_s0, 16, %s127_s25, [#allocation3]  }
  0x22   : > { %s968_s28 = smov (%p808_p6, %s31_s28), 0  ;;  %s459_s7 = sshll.u32 %s137_s30, 7 }
  0x23   : > { %s56_s8 = ssub.s32 %s696_s13, %s968_s28  ;;  %s474_s15 = sshll.u32 %s696_s13, 11 }
  0x24   : > { %p59_p9 = scmp.eq.s32.totalorder %s56_s8, 0  ;;  %s149_s24 = scalar_lea.hbm %s947_s1, %s474_s15 }
  0x25   : > { %s141_s27 = scalar_lea.vmem [#allocation5], %s459_s7  ;;  %s138_s5 = scalar_lea.sflag [#allocation6], %s137_s30 }
  0x26   : > { %s150_s3 = sshll.u32 %s141_s27, 4  ;;  %p590_p8 = pneg %p797_p4  ;;  %s151_s3 = int_to_ptr.vmem [resolvable:$true] %s150_s3 }
  0x27   : > { %s833_s4 = scalar_select %p59_p9, %s688_s11, %s61_s17  }
  0x28   : > { %s601_s25 = scalar_lea.vmem %s151_s3, 2048  ;;  %s703_s29 = smov [#allocation5]  }
  0x29   : > { %p602_p12 = scmp.ne.s32.totalorder %s151_s3, %s601_s25  ;;  %s606_s6 = sshll.u32 %s703_s29, 4  ;;  %s607_s6 = int_to_ptr.vmem [resolvable:$false] %s606_s6 }
  0x2a   : > { %s608_s8 = scalar_lea.vmem %s607_s6, 4096  ;;  %p609_p10 = scmp.lt.s32.totalorder %s151_s3, %s607_s6 }
  0x2b   : > { %p604_p2 = pnand %p602_p12, %p590_p8  ;;  %p610_p11 = scmp.lt.s32.totalorder %s608_s8, %s601_s25 }
  0x2d   : > { %p605_p6 = pneg %p604_p2  ;;  %p611_p5 = por %p610_p11, %p609_p10 }
  0x2f   : > { %p612_p1 = pnand %p611_p5, %p605_p6 }
  0x31   : > { %615 = shalt.err (!%p612_p1)
}
  0x32   : > { %s704_s7 = smov 256   ;;  %s705_s17 = smov 16  }
  0x33   : > { %491 = dma.hbm_to_vmem [thread:$0]  (!%p797_p4), %s149_s24, 2048, %s151_s3, %s138_s5, %s704_s7, %s704_s7, %s705_s17  }
  0x34   : > { %162 = sbr.rel (%p788_p13) target bundleno = 329 (0x149), region = 28 }
  0x39   : > { %667 = dma.done.wait (%p763_p3), [#allocation3], 16  }
  0x3a   : > { %669 = vsyncadd (%p763_p3), [#allocation3], 4294967280  ;;  %s846_s30 = sand.u32 1, %s684_s10  }
  0x3b   : > { %s464_s15 = sshll.u32 %s846_s30, 7  ;;  %s169_s16 = scalar_lea.sflag [#allocation6], %s846_s30 }
  0x3c   : > { %s852_s26 = scalar_lea.vmem [#allocation5], %s464_s15 }
  0x3d   : > { %671 = dma.done.wait (%p773_p7), %s169_s16, 2048  }
  0x3e   : > { %673 = vsyncadd (%p773_p7), %s169_s16, 4294965248  ;;  %v706_v0 = vmov 0.0   ;;  %v859_v1 = vld [vmem:[%s852_s26 + $0x78] sm:$0xff]  ;;  %v209_v2 = vld [vmem:[%s852_s26 + $0x70] sm:$0xff]  ;;  %vm212_vm0 = vcmask 523264   ;;  %v299_v26 = vlaneseq  ;;  %s475_s18 = sshll.u32 %s692_s12, 11 }
  0x3f   : > { %280 = vmatprep.mubr.f32.mxu0 %v706_v0  ;;  %v863_v3 = vld [vmem:[%s852_s26 + $0x68] sm:$0xff]  ;;  %232 = vmatprep.subr.mxu0 %v859_v1  ;;  %v207_v4 = vld [vmem:[%s852_s26 + $0x60] sm:$0xff]  ;;  %v868_v5 = vld [vmem:[%s852_s26 + $0x58] sm:$0xff]  ;;  %s192_s20 = scalar_lea.vmem [#allocation7], %s464_s15  ;;  %s892_s12 = scalar_lea.hbm %s948_s2, %s475_s18 }
  0x40   : > { %233 = vmatpush1.msra.mxu0 %v209_v2  ;;  %v205_v6 = vld [vmem:[%s852_s26 + $0x50] sm:$0xff]  ;;  %v873_v7 = vld [vmem:[%s852_s26 + $0x48] sm:$0xff]  ;;  %v203_v8 = vld [vmem:[%s852_s26 + $0x40] sm:$0xff]  ;;  %v300_v27 = vshrl.u32 %v299_v26, 7  ;;  %s355_s23 = sshll.u32 %s192_s20, 4  ;;  %s340_s27 = scalar_lea.sflag [#allocation4], %s846_s30  ;;  %s894_s23 = int_to_ptr.vmem [resolvable:$true] %s355_s23 }
  0x41   : > { %234 = vmatprep.subr.mxu0 %v863_v3  ;;  %v202_v9 = vld [vmem:[%s852_s26 + $0x38] sm:$0xff]  ;;  %v201_v10 = vld [vmem:[%s852_s26 + $0x30] sm:$0xff]  ;;  %v200_v11 = vld [vmem:[%s852_s26 + $0x28] sm:$0xff]  ;;  %s616_s3 = scalar_lea.vmem %s894_s23, 2048  ;;  %p959_p7 = scmp.ne.s32.totalorder %s953_s21, 0 }
  0x42   : > { %235 = vmatpush1.msra.mxu0 %v207_v4  ;;  %v199_v12 = vld [vmem:[%s852_s26 + $0x20] sm:$0xff]  ;;  %v198_v13 = vld [vmem:[%s852_s26 + $0x18] sm:$0xff]  ;;  %v197_v14 = vld [vmem:[%s852_s26 + $0x10] sm:$0xff]  ;;  %v301_v28 = vsub.s32 0, %v300_v27  ;;  %p617_p3 = scmp.ne.s32.totalorder %s894_s23, %s616_s3  ;;  %s707_s5 = smov [#allocation7]  }
  0x43   : > { %236 = vmatprep.subr.mxu0 %v868_v5  ;;  %v196_v15 = vld [vmem:[%s852_s26 + $0x8] sm:$0xff]  ;;  %v195_v16 = vld [vmem:[%s852_s26] sm:$0xff]  ;;  %v211_v17 = vld [vmem:[#allocation2] sm:$0x1]  ;;  %s620_s25 = sshll.u32 %s707_s5, 4  ;;  %s621_s25 = int_to_ptr.vmem [resolvable:$false] %s620_s25 }
  0x44   : > { %237 = vmatpush1.msra.mxu0 %v205_v6  ;;  %p618_p13 = pnand %p617_p3, %p959_p7  ;;  %s622_s29 = scalar_lea.vmem %s621_s25, 4096 }
  0x45   : > { %238 = vmatprep.subr.mxu0 %v873_v7  ;;  %p623_p0 = scmp.lt.s32.totalorder %s894_s23, %s621_s25  ;;  %p624_p9 = scmp.lt.s32.totalorder %s622_s29, %s616_s3 }
  0x46   : > { %239 = vmatpush1.msra.mxu0 %v203_v8  ;;  %p619_p4 = pneg %p618_p13 }
  0x47   : > { %240 = vmatprep.subr.mxu0 %v202_v9  ;;  %p625_p8 = por %p624_p9, %p623_p0 }
  0x48   : > { %241 = vmatpush1.msra.mxu0 %v201_v10 }
  0x49   : > { %242 = vmatprep.subr.mxu0 %v200_v11  ;;  %p626_p12 = pnand %p625_p8, %p619_p4 }
  0x4a   : > { %243 = vmatpush1.msra.mxu0 %v199_v12 }
  0x4b   : > { %244 = vmatprep.subr.mxu0 %v198_v13 }
  0x4c   : > { %245 = vmatpush1.msra.mxu0 %v197_v14 }
  0x4d   : > { %246 = vmatprep.subr.mxu0 %v196_v15 }
  0x4e   : > { %247 = vmatpush1.msra.mxu0 %v195_v16 }
  0x4f   : > { %466 = vmatmul.mubr.msk.f32.vlgmr.msra.gmra.mxu0 %vm212_vm0, %v211_v17 }
 0x10f   : > { %v282_v18 = vpop.f32.mrf.mxu0 }
 0x110   : > { %v467_v19 = vmul.f32 -1.442695, %v282_v18 }
 0x111   : > { %v284_v20 = vpop.f32.mrf.mxu0 }
 0x112   : > { %554 = vpow2.f32 %v467_v19  ;;  %v468_v21 = vmul.f32 -1.442695, %v284_v20 }
 0x114   : > { %556 = vpow2.f32 %v468_v21 }
 0x11f   : > { %v555_v22 = vpop.eup %554 }
 0x120   : > { %v293_v23 = vadd.f32 1.0, %v555_v22 }
 0x121   : > { %v557_v24 = vpop.eup %556 }
 0x122   : > { %558 = vrcp.f32 %v293_v23  ;;  %v294_v25 = vadd.f32 1.0, %v557_v24 }
 0x124   : > { %560 = vrcp.f32 %v294_v25 }
 0x12f   : > { %v559_v29 = vpop.eup %558 }
 0x130   : > { %v302_v30 = vrot.slane %v559_v29, %v301_v28 }
 0x131   : > { %v561_v31 = vpop.eup %560 }
 0x132   : > { %v307_v32 = vmul.f32 %v302_v30, %v195_v16  ;;  %v309_v33 = vmul.f32 %v302_v30, %v197_v14  ;;  %v311_v34 = vmul.f32 %v302_v30, %v199_v12  ;;  %v313_v35 = vmul.f32 %v302_v30, %v201_v10 }
 0x133   : > { %v315_v36 = vmul.f32 %v302_v30, %v203_v8  ;;  %v317_v37 = vmul.f32 %v302_v30, %v205_v6  ;;  %v319_v38 = vmul.f32 %v302_v30, %v207_v4  ;;  %v321_v39 = vmul.f32 %v302_v30, %v209_v2 }
 0x134   : > { %323 = vst [vmem:[%s192_s20] sm:$0xff] %v307_v32  ;;  %325 = vst [vmem:[%s192_s20 + $0x10] sm:$0xff] %v309_v33  ;;  %v306_v40 = vrot.slane %v561_v31, %v301_v28 }
 0x135   : > { %327 = vst [vmem:[%s192_s20 + $0x20] sm:$0xff] %v311_v34  ;;  %329 = vst [vmem:[%s192_s20 + $0x30] sm:$0xff] %v313_v35 }
 0x136   : > { %331 = vst [vmem:[%s192_s20 + $0x40] sm:$0xff] %v315_v36  ;;  %333 = vst [vmem:[%s192_s20 + $0x50] sm:$0xff] %v317_v37  ;;  %v308_v41 = vmul.f32 %v306_v40, %v196_v15  ;;  %v310_v42 = vmul.f32 %v306_v40, %v198_v13  ;;  %v312_v43 = vmul.f32 %v306_v40, %v200_v11 }
 0x137   : > { %335 = vst [vmem:[%s192_s20 + $0x60] sm:$0xff] %v319_v38  ;;  %337 = vst [vmem:[%s192_s20 + $0x70] sm:$0xff] %v321_v39  ;;  %v314_v44 = vmul.f32 %v306_v40, %v202_v9  ;;  %v316_v45 = vmul.f32 %v306_v40, %v873_v7  ;;  %v318_v46 = vmul.f32 %v306_v40, %v868_v5 }
 0x138   : > { %v320_v47 = vmul.f32 %v306_v40, %v863_v3  ;;  %v322_v48 = vmul.f32 %v306_v40, %v859_v1  ;;  %324 = vst [vmem:[%s192_s20 + $0x8] sm:$0xff] %v308_v41  ;;  %326 = vst [vmem:[%s192_s20 + $0x18] sm:$0xff] %v310_v42 }
 0x139   : > { %328 = vst [vmem:[%s192_s20 + $0x28] sm:$0xff] %v312_v43  ;;  %330 = vst [vmem:[%s192_s20 + $0x38] sm:$0xff] %v314_v44 }
 0x13a   : > { %332 = vst [vmem:[%s192_s20 + $0x48] sm:$0xff] %v316_v45  ;;  %334 = vst [vmem:[%s192_s20 + $0x58] sm:$0xff] %v318_v46 }
 0x13b   : > { %336 = vst [vmem:[%s192_s20 + $0x68] sm:$0xff] %v320_v47  ;;  %338 = vst [vmem:[%s192_s20 + $0x78] sm:$0xff] %v322_v48 }
 0x13c   : > { %629 = shalt.err (!%p626_p12)
}
 0x13d   : > { %s630_s6 = scalar_lea.hbm %s892_s12, 2048  ;;  %s634_s17 = scalar_lea.hbm %s948_s2, 4096 }
 0x13e   : > { %p631_p2 = scmp.ne.s32.totalorder %s892_s12, %s630_s6  ;;  %p635_p11 = scmp.lt.s32.totalorder %s892_s12, %s948_s2 }
 0x13f   : > { %p636_p5 = scmp.lt.s32.totalorder %s634_s17, %s630_s6 }
 0x140   : > { %p632_p6 = pnand %p631_p2, %p959_p7 }
 0x141   : > { %p637_p1 = por %p636_p5, %p635_p11 }
 0x142   : > { %p633_p10 = pneg %p632_p6 }
 0x144   : > { %p638_p3 = pnand %p637_p1, %p633_p10 }
 0x146   : > { %641 = shalt.err (!%p638_p3)
}
 0x147   : > { %s708_s26 = smov 256   ;;  %s709_s18 = smov 16  }
 0x148   : > { %482 = dma.vmem_to_hbm [thread:$0]  (%p959_p7), %s894_s23, 2048, %s892_s12, %s340_s27, %s708_s26, %s708_s26, %s709_s18  }
 0x149 PF: > { %s370_s20 = sand.u32 1, %s680_s9   ;;  %p960_p13 = scmp.ne.s32.totalorder %s954_s22, 0 }
 0x14a   : > { %p961_p4 = scmp.ge.s32.totalorder %s700_s14, 2  ;;  %s371_s19 = scalar_lea.sflag [#allocation4], %s370_s20 }
 0x14c   : > { %p493_p0 = pnand %p961_p4, %p960_p13 }
 0x14e   : > { %p494_p9 = pneg %p493_p0 }
 0x150   : > { %675 = dma.done.wait (%p494_p9), %s371_s19, 2048  }
 0x151   : > { %677 = vsyncadd (%p494_p9), %s371_s19, 4294965248  ;;  %s19_s14 = sadd.s32 1, %s700_s14   ;;  %s962_s9 = smov %s684_s10 }
 0x152   : > { %p16_p8 = scmp.ge.s32.totalorder %s19_s14, 4   ;;  %s963_s10 = smov %s688_s11 }
 0x153   : > { %s964_s11 = smov %s833_s4  ;;  %s965_s12 = smov %s696_s13 }
 0x154   : > { %s966_s13 = smov %s968_s28  ;;  %18 = sbr.rel (!%p16_p8) target bundleno = 7 (0x7), region = 78 }
 0x159   :  { %376 = vsyncpa [#allocation3], 1 }
 0x15a   :  { %378 = vsyncpa [#allocation3 + $0x1], 1 }
 0x15b   :  { %379 = vsyncpa [#allocation6], 1 }
 0x15c   :  { %381 = vsyncpa [#allocation6 + $0x1], 1 }
 0x15d   :  { %382 = vsyncpa [#allocation4], 1 }
 0x15e   :  { %384 = vsyncpa [#allocation4 + $0x1], 1 }

</bundles_post_ra>
